<compile_context>
chip_gen: v5e
topology: v5e:2x2
jax: 0.10.0
libtpu: 0.0.40
codegen_flags: <defaults>
</compile_context>

<pallas_src>
import functools
import math

import jax
import jax.numpy as jnp
from jax.experimental import pallas as pl
from jax.experimental.pallas import tpu as pltpu


def _layer_norm(z, alpha, bias, eps, features):
    # torch LayerNormalization from the spec: mean over last dim, *unbiased*
    # std (divisor N-1), eps added to the std (not the variance).
    m = jnp.mean(z, axis=-1, keepdims=True)
    var = jnp.sum((z - m) ** 2, axis=-1, keepdims=True) * (1.0 / (features - 1))
    inv = pl.reciprocal(jnp.sqrt(var) + eps, approx=True)   # EUP, off the VALU
    return alpha * (z - m) * inv + bias


def encoder_block_kernel(
    x_ref,      # (B*S, E)  f32, batch-major flattened input
    mask_ref,   # (S, S)    f32 additive attention mask (src_mask)
    wqkv_ref,   # (E, 3E)   bf16 fused QKV weight; q-columns pre-scaled by 1/sqrt(dh)
    wo_ref,     # (E, E)    bf16
    w1_ref,     # (E, d_ff) bf16
    w2_ref,     # (d_ff, E) bf16
    a1_ref,     # (1, E)    f32 LayerNorm 1 alpha
    b1_ref,     # (1, E)    f32 LayerNorm 1 bias
    a2_ref,     # (1, E)    f32 LayerNorm 2 alpha
    b2_ref,     # (1, E)    f32 LayerNorm 2 bias
    o_ref,      # (B*S, E)  f32
    *,
    num_heads: int,
    batch: int,
    seq: int,
):
    BS, E = x_ref.shape
    B, S, H = batch, seq, num_heads
    dh = E // H
    eps = 1e-6

    xf = x_ref[...]                          # f32, kept for residual + LN
    x_bf = xf.astype(jnp.bfloat16)           # bf16 MXU operand only

    # ---- fused QKV projection: single fat bf16 matmul, f32 accumulation ----
    qkv = jnp.dot(x_bf, wqkv_ref[...], preferred_element_type=jnp.float32)
    qkv_bf = qkv.astype(jnp.bfloat16).reshape(B, S, 3 * E)   # leading-dim split

    # Hoisted mask broadcast (done once, reused by every head).
    mask_b = jnp.broadcast_to(mask_ref[...][None, :, :], (B, S, S))

    # ---- multi-head attention, batched over B inside a short static loop ----
    # TODO(synk): at production sizes (dh multiple of 128, or head axis on the
    # grid) these 8-lane slices of qkv_bf become full-vreg accesses; at dh=8
    # they are unavoidable sub-vreg extractions.
    ctx_heads = []
    for h in range(H):
        q = qkv_bf[:, :, h * dh:(h + 1) * dh]                     # (B, S, dh)
        k = qkv_bf[:, :, E + h * dh:E + (h + 1) * dh]             # (B, S, dh)
        v = qkv_bf[:, :, 2 * E + h * dh:2 * E + (h + 1) * dh]     # (B, S, dh)

        # 1/sqrt(dh) already folded into the q-columns of wqkv.
        s = jax.lax.dot_general(
            q, k, (((2,), (2,)), ((0,), (0,))),
            preferred_element_type=jnp.float32)                    # (B, S, S) f32
        s = s + mask_b
        s = s - jnp.max(s, axis=-1, keepdims=True)
        p = jnp.exp(s)
        # softmax denominator on the EUP (approximate reciprocal)
        p = p * pl.reciprocal(jnp.sum(p, axis=-1, keepdims=True), approx=True)

        ctx_heads.append(jax.lax.dot_general(
            p.astype(jnp.bfloat16), v, (((2,), (1,)), ((0,), (0,))),
            preferred_element_type=jnp.float32))                   # (B, S, dh) f32

    # ---- single K=E out-projection (heads concatenated once) ----
    ctx_all = jnp.concatenate(ctx_heads, axis=-1).reshape(BS, E)   # (B*S, E) f32
    attn = jnp.dot(ctx_all.astype(jnp.bfloat16), wo_ref[...],
                   preferred_element_type=jnp.float32)             # (B*S, E) f32

    # ---- residual 1 + LayerNorm 1 (single slab, f32) ----
    y1 = _layer_norm(xf + attn, a1_ref[...], b1_ref[...], eps, E)

    # ---- feed-forward (ReLU, no biases) + residual 2 + LayerNorm 2 ----
    hdn = jnp.maximum(
        jnp.dot(y1.astype(jnp.bfloat16), w1_ref[...],
                preferred_element_type=jnp.float32), 0.0)
    f = jnp.dot(hdn.astype(jnp.bfloat16), w2_ref[...],
                preferred_element_type=jnp.float32)
    # TODO(synk): E=32 makes this a 25%-lane-occupancy masked store; at
    # production keep E a multiple of 128 (lane-dense I/O is the biggest lever).
    o_ref[...] = _layer_norm(y1 + f, a2_ref[...], b2_ref[...], eps, E)


def pack_params(params, num_heads):
    """One-time parameter packing (outside the per-forward path):
    - fuse wq|wk|wv into one (E, 3E) weight,
    - fold the 1/sqrt(dh) attention scale into the q columns,
    - cast MXU weight operands to bf16 (LayerNorm params stay f32)."""
    E = params["wq"].shape[0]
    dh = E // num_heads
    scale = 1.0 / math.sqrt(dh)
    wqkv = jnp.concatenate(
        [params["wq"] * scale, params["wk"], params["wv"]], axis=1)
    packed = dict(params)
    packed["wqkv"] = wqkv.astype(jnp.bfloat16)
    packed["wo"] = params["wo"].astype(jnp.bfloat16)
    packed["w1"] = params["w1"].astype(jnp.bfloat16)
    packed["w2"] = params["w2"].astype(jnp.bfloat16)
    return packed


def vanilla_encoder_block(x, src_mask, packed, num_heads):
    """x: (S, B, E) float32; src_mask: (S, S) additive float mask (zeros = no mask).
    Returns (B, S, E) float32 (post_ln branch permutes to batch-first and never
    permutes back)."""
    S, B, E = x.shape
    # Batch-major flatten done in XLA, outside the kernel (free at these sizes).
    xf = jnp.transpose(x, (1, 0, 2)).reshape(B * S, E)

    kernel = functools.partial(
        encoder_block_kernel, num_heads=num_heads, batch=B, seq=S)
    vmem = pl.BlockSpec(memory_space=pltpu.MemorySpace.VMEM)
    args = (
        xf, src_mask, packed["wqkv"],
        packed["wo"], packed["w1"], packed["w2"],
        packed["a1"].reshape(1, E), packed["b1"].reshape(1, E),
        packed["a2"].reshape(1, E), packed["b2"].reshape(1, E),
    )
    # TODO(synk): production — PrefetchScalarGridSpec with a "parallel" grid
    # over row blocks of B*S (weights on constant index_maps), sized for v7x's
    # 64 MiB VMEM with explicit vmem_limit_bytes.
    out = pl.pallas_call(
        kernel,
        out_shape=jax.ShapeDtypeStruct((B * S, E), jnp.float32),
        in_specs=[vmem] * len(args),
        out_specs=vmem,
    )(*args)
    return out.reshape(B, S, E)


def reference_encoder_block(x, mask, params, num_heads):
    """Pure-JAX f32 reference mirroring the PyTorch forward (eval mode)."""
    S, B, E = x.shape
    dh = E // num_heads
    scale = 1.0 / math.sqrt(dh)
    eps = 1e-6

    q = jnp.einsum('sbe,ef->sbf', x, params["wq"])
    k = jnp.einsum('sbe,ef->sbf', x, params["wk"])
    v = jnp.einsum('sbe,ef->sbf', x, params["wv"])
    qh = q.reshape(S, B, num_heads, dh)
    kh = k.reshape(S, B, num_heads, dh)
    vh = v.reshape(S, B, num_heads, dh)
    scores = jnp.einsum('sbhd,tbhd->bhst', qh, kh) * scale + mask[None, None]
    p = jax.nn.softmax(scores, axis=-1)
    ao = jnp.einsum('bhst,tbhd->sbhd', p, vh).reshape(S, B, E)
    attn = jnp.einsum('sbe,ef->sbf', ao, params["wo"])

    y = x + attn
    y = jnp.transpose(y, (1, 0, 2))  # (B, S, E)

    def ln(z, a, bb):
        m = jnp.mean(z, axis=-1, keepdims=True)
        sd = jnp.sqrt(jnp.sum((z - m) ** 2, axis=-1, keepdims=True) / (E - 1))
        return a * (z - m) / (sd + eps) + bb

    y1 = ln(y, params["a1"], params["b1"])
    f = jnp.maximum(y1 @ params["w1"], 0.0) @ params["w2"]
    z = y1 + f
    return ln(z, params["a2"], params["b2"])


if __name__ == "__main__":
    S, B, d_model, h, d_ff = 8, 2, 32, 4, 64

    key = jax.random.PRNGKey(0)
    keys = jax.random.split(key, 8)

    # Deterministic synthetic parameters (shapes follow the PyTorch module).
    # Weights stored transposed so the kernel computes x @ W directly.
    params = {
        "wq": jax.random.normal(keys[0], (d_model, d_model), jnp.float32) * 0.1,
        "wk": jax.random.normal(keys[1], (d_model, d_model), jnp.float32) * 0.1,
        "wv": jax.random.normal(keys[2], (d_model, d_model), jnp.float32) * 0.1,
        "wo": jax.random.normal(keys[3], (d_model, d_model), jnp.float32) * 0.1,
        "w1": jax.random.normal(keys[4], (d_model, d_ff), jnp.float32) * 0.1,
        "w2": jax.random.normal(keys[5], (d_ff, d_model), jnp.float32) * 0.1,
        "a1": jnp.ones((d_model,), jnp.float32),   # LayerNormalization alpha init
        "b1": jnp.zeros((d_model,), jnp.float32),  # LayerNormalization bias init
        "a2": jnp.ones((d_model,), jnp.float32),
        "b2": jnp.zeros((d_model,), jnp.float32),
    }
    packed = pack_params(params, num_heads=h)   # one-time packing (not per forward)

    x = jax.random.normal(keys[6], (S, B, d_model), jnp.float32)
    src_mask = jnp.zeros((S, S), jnp.float32)   # additive float mask (no masking)

    out = vanilla_encoder_block(x, src_mask, packed, num_heads=h)
    out = jax.block_until_ready(out)

    ref = reference_encoder_block(x, src_mask, params, num_heads=h)
    assert out.shape == (B, S, d_model)
    # Tolerance loosened vs the f32-only version: MXU operands are bf16
    # (f32 accumulation) and softmax/LayerNorm reciprocals are EUP-approximate.
    err = float(jnp.max(jnp.abs(out - ref)))
    assert jnp.allclose(out, ref, atol=3e-2, rtol=3e-2), err

    print("KERNEL_OK")
</pallas_src>

<mosaic_0001>
module attributes {stable_mosaic.version = 11 : i64} {
  func.func @encoder_block_kernel(%arg0: memref<16x32xf32, #tpu.memory_space<vmem>>, %arg1: memref<8x8xf32, #tpu.memory_space<vmem>>, %arg2: memref<32x96xbf16, #tpu.memory_space<vmem>>, %arg3: memref<32x32xbf16, #tpu.memory_space<vmem>>, %arg4: memref<32x64xbf16, #tpu.memory_space<vmem>>, %arg5: memref<64x32xbf16, #tpu.memory_space<vmem>>, %arg6: memref<1x32xf32, #tpu.memory_space<vmem>>, %arg7: memref<1x32xf32, #tpu.memory_space<vmem>>, %arg8: memref<1x32xf32, #tpu.memory_space<vmem>>, %arg9: memref<1x32xf32, #tpu.memory_space<vmem>>, %arg10: memref<16x32xf32, #tpu.memory_space<vmem>>) attributes {dimension_semantics = [], scalar_prefetch = 0 : i64, scratch_operands = 0 : i64, tpu.core_type = #tpu.core_type<tc>} {
    %c0 = arith.constant 0 : index
    %c0_0 = arith.constant 0 : index
    %0 = vector.load %arg0[%c0, %c0_0] : memref<16x32xf32, #tpu.memory_space<vmem>>, vector<16x32xf32>
    %1 = arith.truncf %0 : vector<16x32xf32> to vector<16x32xbf16>
    %c0_1 = arith.constant 0 : index
    %c0_2 = arith.constant 0 : index
    %2 = vector.load %arg2[%c0_1, %c0_2] : memref<32x96xbf16, #tpu.memory_space<vmem>>, vector<32x96xbf16>
    %cst = arith.constant dense<0.000000e+00> : vector<16x96xf32>
    %3 = tpu.matmul %1, %2, %cst {dimension_numbers = #tpu.dot_dimension_numbers<[1], [0], [0], [1], [0, 0, 1, 1], [], []>} : vector<16x32xbf16>, vector<32x96xbf16>, vector<16x96xf32> -> vector<16x96xf32>
    %4 = arith.truncf %3 : vector<16x96xf32> to vector<16x96xbf16>
    %5 = vector.shape_cast %4 : vector<16x96xbf16> to vector<2x8x96xbf16>
    %c0_3 = arith.constant 0 : index
    %c0_4 = arith.constant 0 : index
    %6 = vector.load %arg1[%c0_3, %c0_4] : memref<8x8xf32, #tpu.memory_space<vmem>>, vector<8x8xf32>
    %7 = vector.shape_cast %6 : vector<8x8xf32> to vector<1x8x8xf32>
    %8 = vector.shape_cast %7 : vector<1x8x8xf32> to vector<1x8x8xf32>
    %9 = vector.broadcast %8 : vector<1x8x8xf32> to vector<2x8x8xf32>
    %10 = vector.extract_strided_slice %5 {offsets = [0, 0, 0], sizes = [2, 8, 8], strides = [1, 1, 1]} : vector<2x8x96xbf16> to vector<2x8x8xbf16>
    %11 = vector.extract_strided_slice %5 {offsets = [0, 0, 32], sizes = [2, 8, 8], strides = [1, 1, 1]} : vector<2x8x96xbf16> to vector<2x8x8xbf16>
    %12 = vector.extract_strided_slice %5 {offsets = [0, 0, 64], sizes = [2, 8, 8], strides = [1, 1, 1]} : vector<2x8x96xbf16> to vector<2x8x8xbf16>
    %cst_5 = arith.constant dense<0.000000e+00> : vector<2x8x8xf32>
    %13 = tpu.matmul %10, %11, %cst_5 {dimension_numbers = #tpu.dot_dimension_numbers<[2], [2], [1], [1], [0, 0, 0, 1, 1, 1], [0], [0]>} : vector<2x8x8xbf16>, vector<2x8x8xbf16>, vector<2x8x8xf32> -> vector<2x8x8xf32>
    %14 = arith.addf %13, %9 : vector<2x8x8xf32>
    %cst_6 = arith.constant dense<0xFF800000> : vector<2x8xf32>
    %15 = vector.multi_reduction <maximumf>, %14, %cst_6 [2] : vector<2x8x8xf32> to vector<2x8xf32>
    %16 = vector.shape_cast %15 : vector<2x8xf32> to vector<2x8x1xf32>
    %17 = vector.broadcast %16 : vector<2x8x1xf32> to vector<2x8x8xf32>
    %18 = arith.subf %14, %17 : vector<2x8x8xf32>
    %19 = math.exp %18 : vector<2x8x8xf32>
    %cst_7 = arith.constant dense<0.000000e+00> : vector<2x8xf32>
    %20 = vector.multi_reduction <add>, %19, %cst_7 [2] : vector<2x8x8xf32> to vector<2x8xf32>
    %21 = vector.shape_cast %20 : vector<2x8xf32> to vector<2x8x1xf32>
    %22 = tpu.reciprocal %21 {approx = true} : vector<2x8x1xf32> -> vector<2x8x1xf32>
    %23 = vector.broadcast %22 : vector<2x8x1xf32> to vector<2x8x8xf32>
    %24 = arith.mulf %19, %23 : vector<2x8x8xf32>
    %25 = arith.truncf %24 : vector<2x8x8xf32> to vector<2x8x8xbf16>
    %cst_8 = arith.constant dense<0.000000e+00> : vector<2x8x8xf32>
    %26 = tpu.matmul %25, %12, %cst_8 {dimension_numbers = #tpu.dot_dimension_numbers<[2], [1], [1], [2], [0, 0, 0, 1, 1, 2], [0], [0]>} : vector<2x8x8xbf16>, vector<2x8x8xbf16>, vector<2x8x8xf32> -> vector<2x8x8xf32>
    %27 = vector.extract_strided_slice %5 {offsets = [0, 0, 8], sizes = [2, 8, 8], strides = [1, 1, 1]} : vector<2x8x96xbf16> to vector<2x8x8xbf16>
    %28 = vector.extract_strided_slice %5 {offsets = [0, 0, 40], sizes = [2, 8, 8], strides = [1, 1, 1]} : vector<2x8x96xbf16> to vector<2x8x8xbf16>
    %29 = vector.extract_strided_slice %5 {offsets = [0, 0, 72], sizes = [2, 8, 8], strides = [1, 1, 1]} : vector<2x8x96xbf16> to vector<2x8x8xbf16>
    %cst_9 = arith.constant dense<0.000000e+00> : vector<2x8x8xf32>
    %30 = tpu.matmul %27, %28, %cst_9 {dimension_numbers = #tpu.dot_dimension_numbers<[2], [2], [1], [1], [0, 0, 0, 1, 1, 1], [0], [0]>} : vector<2x8x8xbf16>, vector<2x8x8xbf16>, vector<2x8x8xf32> -> vector<2x8x8xf32>
    %31 = arith.addf %30, %9 : vector<2x8x8xf32>
    %cst_10 = arith.constant dense<0xFF800000> : vector<2x8xf32>
    %32 = vector.multi_reduction <maximumf>, %31, %cst_10 [2] : vector<2x8x8xf32> to vector<2x8xf32>
    %33 = vector.shape_cast %32 : vector<2x8xf32> to vector<2x8x1xf32>
    %34 = vector.broadcast %33 : vector<2x8x1xf32> to vector<2x8x8xf32>
    %35 = arith.subf %31, %34 : vector<2x8x8xf32>
    %36 = math.exp %35 : vector<2x8x8xf32>
    %cst_11 = arith.constant dense<0.000000e+00> : vector<2x8xf32>
    %37 = vector.multi_reduction <add>, %36, %cst_11 [2] : vector<2x8x8xf32> to vector<2x8xf32>
    %38 = vector.shape_cast %37 : vector<2x8xf32> to vector<2x8x1xf32>
    %39 = tpu.reciprocal %38 {approx = true} : vector<2x8x1xf32> -> vector<2x8x1xf32>
    %40 = vector.broadcast %39 : vector<2x8x1xf32> to vector<2x8x8xf32>
    %41 = arith.mulf %36, %40 : vector<2x8x8xf32>
    %42 = arith.truncf %41 : vector<2x8x8xf32> to vector<2x8x8xbf16>
    %cst_12 = arith.constant dense<0.000000e+00> : vector<2x8x8xf32>
    %43 = tpu.matmul %42, %29, %cst_12 {dimension_numbers = #tpu.dot_dimension_numbers<[2], [1], [1], [2], [0, 0, 0, 1, 1, 2], [0], [0]>} : vector<2x8x8xbf16>, vector<2x8x8xbf16>, vector<2x8x8xf32> -> vector<2x8x8xf32>
    %44 = vector.extract_strided_slice %5 {offsets = [0, 0, 16], sizes = [2, 8, 8], strides = [1, 1, 1]} : vector<2x8x96xbf16> to vector<2x8x8xbf16>
    %45 = vector.extract_strided_slice %5 {offsets = [0, 0, 48], sizes = [2, 8, 8], strides = [1, 1, 1]} : vector<2x8x96xbf16> to vector<2x8x8xbf16>
    %46 = vector.extract_strided_slice %5 {offsets = [0, 0, 80], sizes = [2, 8, 8], strides = [1, 1, 1]} : vector<2x8x96xbf16> to vector<2x8x8xbf16>
    %cst_13 = arith.constant dense<0.000000e+00> : vector<2x8x8xf32>
    %47 = tpu.matmul %44, %45, %cst_13 {dimension_numbers = #tpu.dot_dimension_numbers<[2], [2], [1], [1], [0, 0, 0, 1, 1, 1], [0], [0]>} : vector<2x8x8xbf16>, vector<2x8x8xbf16>, vector<2x8x8xf32> -> vector<2x8x8xf32>
    %48 = arith.addf %47, %9 : vector<2x8x8xf32>
    %cst_14 = arith.constant dense<0xFF800000> : vector<2x8xf32>
    %49 = vector.multi_reduction <maximumf>, %48, %cst_14 [2] : vector<2x8x8xf32> to vector<2x8xf32>
    %50 = vector.shape_cast %49 : vector<2x8xf32> to vector<2x8x1xf32>
    %51 = vector.broadcast %50 : vector<2x8x1xf32> to vector<2x8x8xf32>
    %52 = arith.subf %48, %51 : vector<2x8x8xf32>
    %53 = math.exp %52 : vector<2x8x8xf32>
    %cst_15 = arith.constant dense<0.000000e+00> : vector<2x8xf32>
    %54 = vector.multi_reduction <add>, %53, %cst_15 [2] : vector<2x8x8xf32> to vector<2x8xf32>
    %55 = vector.shape_cast %54 : vector<2x8xf32> to vector<2x8x1xf32>
    %56 = tpu.reciprocal %55 {approx = true} : vector<2x8x1xf32> -> vector<2x8x1xf32>
    %57 = vector.broadcast %56 : vector<2x8x1xf32> to vector<2x8x8xf32>
    %58 = arith.mulf %53, %57 : vector<2x8x8xf32>
    %59 = arith.truncf %58 : vector<2x8x8xf32> to vector<2x8x8xbf16>
    %cst_16 = arith.constant dense<0.000000e+00> : vector<2x8x8xf32>
    %60 = tpu.matmul %59, %46, %cst_16 {dimension_numbers = #tpu.dot_dimension_numbers<[2], [1], [1], [2], [0, 0, 0, 1, 1, 2], [0], [0]>} : vector<2x8x8xbf16>, vector<2x8x8xbf16>, vector<2x8x8xf32> -> vector<2x8x8xf32>
    %61 = vector.extract_strided_slice %5 {offsets = [0, 0, 24], sizes = [2, 8, 8], strides = [1, 1, 1]} : vector<2x8x96xbf16> to vector<2x8x8xbf16>
    %62 = vector.extract_strided_slice %5 {offsets = [0, 0, 56], sizes = [2, 8, 8], strides = [1, 1, 1]} : vector<2x8x96xbf16> to vector<2x8x8xbf16>
    %63 = vector.extract_strided_slice %5 {offsets = [0, 0, 88], sizes = [2, 8, 8], strides = [1, 1, 1]} : vector<2x8x96xbf16> to vector<2x8x8xbf16>
    %cst_17 = arith.constant dense<0.000000e+00> : vector<2x8x8xf32>
    %64 = tpu.matmul %61, %62, %cst_17 {dimension_numbers = #tpu.dot_dimension_numbers<[2], [2], [1], [1], [0, 0, 0, 1, 1, 1], [0], [0]>} : vector<2x8x8xbf16>, vector<2x8x8xbf16>, vector<2x8x8xf32> -> vector<2x8x8xf32>
    %65 = arith.addf %64, %9 : vector<2x8x8xf32>
    %cst_18 = arith.constant dense<0xFF800000> : vector<2x8xf32>
    %66 = vector.multi_reduction <maximumf>, %65, %cst_18 [2] : vector<2x8x8xf32> to vector<2x8xf32>
    %67 = vector.shape_cast %66 : vector<2x8xf32> to vector<2x8x1xf32>
    %68 = vector.broadcast %67 : vector<2x8x1xf32> to vector<2x8x8xf32>
    %69 = arith.subf %65, %68 : vector<2x8x8xf32>
    %70 = math.exp %69 : vector<2x8x8xf32>
    %cst_19 = arith.constant dense<0.000000e+00> : vector<2x8xf32>
    %71 = vector.multi_reduction <add>, %70, %cst_19 [2] : vector<2x8x8xf32> to vector<2x8xf32>
    %72 = vector.shape_cast %71 : vector<2x8xf32> to vector<2x8x1xf32>
    %73 = tpu.reciprocal %72 {approx = true} : vector<2x8x1xf32> -> vector<2x8x1xf32>
    %74 = vector.broadcast %73 : vector<2x8x1xf32> to vector<2x8x8xf32>
    %75 = arith.mulf %70, %74 : vector<2x8x8xf32>
    %76 = arith.truncf %75 : vector<2x8x8xf32> to vector<2x8x8xbf16>
    %cst_20 = arith.constant dense<0.000000e+00> : vector<2x8x8xf32>
    %77 = tpu.matmul %76, %63, %cst_20 {dimension_numbers = #tpu.dot_dimension_numbers<[2], [1], [1], [2], [0, 0, 0, 1, 1, 2], [0], [0]>} : vector<2x8x8xbf16>, vector<2x8x8xbf16>, vector<2x8x8xf32> -> vector<2x8x8xf32>
    %78 = tpu.concatenate %26, %43, %60, %77 in 2 : vector<2x8x8xf32>, vector<2x8x8xf32>, vector<2x8x8xf32>, vector<2x8x8xf32> -> vector<2x8x32xf32>
    %79 = vector.shape_cast %78 : vector<2x8x32xf32> to vector<16x32xf32>
    %80 = arith.truncf %79 : vector<16x32xf32> to vector<16x32xbf16>
    %c0_21 = arith.constant 0 : index
    %c0_22 = arith.constant 0 : index
    %81 = vector.load %arg3[%c0_21, %c0_22] : memref<32x32xbf16, #tpu.memory_space<vmem>>, vector<32x32xbf16>
    %cst_23 = arith.constant dense<0.000000e+00> : vector<16x32xf32>
    %82 = tpu.matmul %80, %81, %cst_23 {dimension_numbers = #tpu.dot_dimension_numbers<[1], [0], [0], [1], [0, 0, 1, 1], [], []>} : vector<16x32xbf16>, vector<32x32xbf16>, vector<16x32xf32> -> vector<16x32xf32>
    %83 = arith.addf %0, %82 : vector<16x32xf32>
    %c0_24 = arith.constant 0 : index
    %c0_25 = arith.constant 0 : index
    %84 = vector.load %arg6[%c0_24, %c0_25] : memref<1x32xf32, #tpu.memory_space<vmem>>, vector<1x32xf32>
    %c0_26 = arith.constant 0 : index
    %c0_27 = arith.constant 0 : index
    %85 = vector.load %arg7[%c0_26, %c0_27] : memref<1x32xf32, #tpu.memory_space<vmem>>, vector<1x32xf32>
    %cst_28 = arith.constant dense<0.000000e+00> : vector<16xf32>
    %86 = vector.multi_reduction <add>, %83, %cst_28 [1] : vector<16x32xf32> to vector<16xf32>
    %87 = vector.shape_cast %86 : vector<16xf32> to vector<16x1xf32>
    %cst_29 = arith.constant 3.200000e+01 : f32
    %88 = vector.broadcast %cst_29 : f32 to vector<16x1xf32>
    %89 = arith.divf %87, %88 : vector<16x1xf32>
    %90 = vector.broadcast %89 : vector<16x1xf32> to vector<16x32xf32>
    %91 = arith.subf %83, %90 : vector<16x32xf32>
    %92 = arith.mulf %91, %91 : vector<16x32xf32>
    %cst_30 = arith.constant dense<0.000000e+00> : vector<16xf32>
    %93 = vector.multi_reduction <add>, %92, %cst_30 [1] : vector<16x32xf32> to vector<16xf32>
    %94 = vector.shape_cast %93 : vector<16xf32> to vector<16x1xf32>
    %cst_31 = arith.constant 0.0322580636 : f32
    %95 = vector.broadcast %cst_31 : f32 to vector<16x1xf32>
    %96 = arith.mulf %94, %95 : vector<16x1xf32>
    %97 = math.sqrt %96 : vector<16x1xf32>
    %cst_32 = arith.constant 9.99999997E-7 : f32
    %98 = vector.broadcast %cst_32 : f32 to vector<16x1xf32>
    %99 = arith.addf %97, %98 : vector<16x1xf32>
    %100 = tpu.reciprocal %99 {approx = true} : vector<16x1xf32> -> vector<16x1xf32>
    %101 = vector.broadcast %89 : vector<16x1xf32> to vector<16x32xf32>
    %102 = arith.subf %83, %101 : vector<16x32xf32>
    %103 = vector.broadcast %84 : vector<1x32xf32> to vector<16x32xf32>
    %104 = arith.mulf %103, %102 : vector<16x32xf32>
    %105 = vector.broadcast %100 : vector<16x1xf32> to vector<16x32xf32>
    %106 = arith.mulf %104, %105 : vector<16x32xf32>
    %107 = vector.broadcast %85 : vector<1x32xf32> to vector<16x32xf32>
    %108 = arith.addf %106, %107 : vector<16x32xf32>
    %109 = arith.truncf %108 : vector<16x32xf32> to vector<16x32xbf16>
    %c0_33 = arith.constant 0 : index
    %c0_34 = arith.constant 0 : index
    %110 = vector.load %arg4[%c0_33, %c0_34] : memref<32x64xbf16, #tpu.memory_space<vmem>>, vector<32x64xbf16>
    %cst_35 = arith.constant dense<0.000000e+00> : vector<16x64xf32>
    %111 = tpu.matmul %109, %110, %cst_35 {dimension_numbers = #tpu.dot_dimension_numbers<[1], [0], [0], [1], [0, 0, 1, 1], [], []>} : vector<16x32xbf16>, vector<32x64xbf16>, vector<16x64xf32> -> vector<16x64xf32>
    %cst_36 = arith.constant 0.000000e+00 : f32
    %112 = vector.broadcast %cst_36 : f32 to vector<16x64xf32>
    %113 = arith.maximumf %111, %112 : vector<16x64xf32>
    %114 = arith.truncf %113 : vector<16x64xf32> to vector<16x64xbf16>
    %c0_37 = arith.constant 0 : index
    %c0_38 = arith.constant 0 : index
    %115 = vector.load %arg5[%c0_37, %c0_38] : memref<64x32xbf16, #tpu.memory_space<vmem>>, vector<64x32xbf16>
    %cst_39 = arith.constant dense<0.000000e+00> : vector<16x32xf32>
    %116 = tpu.matmul %114, %115, %cst_39 {dimension_numbers = #tpu.dot_dimension_numbers<[1], [0], [0], [1], [0, 0, 1, 1], [], []>} : vector<16x64xbf16>, vector<64x32xbf16>, vector<16x32xf32> -> vector<16x32xf32>
    %117 = arith.addf %108, %116 : vector<16x32xf32>
    %c0_40 = arith.constant 0 : index
    %c0_41 = arith.constant 0 : index
    %118 = vector.load %arg8[%c0_40, %c0_41] : memref<1x32xf32, #tpu.memory_space<vmem>>, vector<1x32xf32>
    %c0_42 = arith.constant 0 : index
    %c0_43 = arith.constant 0 : index
    %119 = vector.load %arg9[%c0_42, %c0_43] : memref<1x32xf32, #tpu.memory_space<vmem>>, vector<1x32xf32>
    %cst_44 = arith.constant dense<0.000000e+00> : vector<16xf32>
    %120 = vector.multi_reduction <add>, %117, %cst_44 [1] : vector<16x32xf32> to vector<16xf32>
    %121 = vector.shape_cast %120 : vector<16xf32> to vector<16x1xf32>
    %cst_45 = arith.constant 3.200000e+01 : f32
    %122 = vector.broadcast %cst_45 : f32 to vector<16x1xf32>
    %123 = arith.divf %121, %122 : vector<16x1xf32>
    %124 = vector.broadcast %123 : vector<16x1xf32> to vector<16x32xf32>
    %125 = arith.subf %117, %124 : vector<16x32xf32>
    %126 = arith.mulf %125, %125 : vector<16x32xf32>
    %cst_46 = arith.constant dense<0.000000e+00> : vector<16xf32>
    %127 = vector.multi_reduction <add>, %126, %cst_46 [1] : vector<16x32xf32> to vector<16xf32>
    %128 = vector.shape_cast %127 : vector<16xf32> to vector<16x1xf32>
    %cst_47 = arith.constant 0.0322580636 : f32
    %129 = vector.broadcast %cst_47 : f32 to vector<16x1xf32>
    %130 = arith.mulf %128, %129 : vector<16x1xf32>
    %131 = math.sqrt %130 : vector<16x1xf32>
    %cst_48 = arith.constant 9.99999997E-7 : f32
    %132 = vector.broadcast %cst_48 : f32 to vector<16x1xf32>
    %133 = arith.addf %131, %132 : vector<16x1xf32>
    %134 = tpu.reciprocal %133 {approx = true} : vector<16x1xf32> -> vector<16x1xf32>
    %135 = vector.broadcast %123 : vector<16x1xf32> to vector<16x32xf32>
    %136 = arith.subf %117, %135 : vector<16x32xf32>
    %137 = vector.broadcast %118 : vector<1x32xf32> to vector<16x32xf32>
    %138 = arith.mulf %137, %136 : vector<16x32xf32>
    %139 = vector.broadcast %134 : vector<16x1xf32> to vector<16x32xf32>
    %140 = arith.mulf %138, %139 : vector<16x32xf32>
    %141 = vector.broadcast %119 : vector<1x32xf32> to vector<16x32xf32>
    %142 = arith.addf %140, %141 : vector<16x32xf32>
    %c0_49 = arith.constant 0 : index
    %c0_50 = arith.constant 0 : index
    %143 = vector.load %arg10[%c0_49, %c0_50] : memref<16x32xf32, #tpu.memory_space<vmem>>, vector<16x32xf32>
    tpu.vector_store %arg10[%c0_49, %c0_50], %142 {strides = array<i32>} : memref<16x32xf32, #tpu.memory_space<vmem>>, vector<16x32xf32>,
    return
  }
}

</mosaic_0001>

<bundles_post_ra>
// kernel: tpu_custom_call.1
= control target key start
LH: loop header
LB: loop body
LE: loop exit
PB: predicated region body
PF: predicated region fallthrough
CT: control target
= control target key end

     0   :  { %15 = vsyncpa [#allocation3], 0  ;;  %s1365_s0 = inlined_call_operand.vmem [shape: f32[16,32], index: 0, kind: input, shape index: {}]   ;;  %s1366_s1 = inlined_call_operand.hbm [shape: f32[8,8], index: 1, kind: input, shape index: {}]   ;;  %s1367_s2 = inlined_call_operand.vmem [shape: bf16[32,96], index: 2, kind: input, shape index: {}]   ;;  %s1368_s3 = inlined_call_operand.vmem [shape: bf16[32,32], index: 3, kind: input, shape index: {}]   ;;  %s1369_s4 = inlined_call_operand.hbm [shape: bf16[32,64], index: 4, kind: input, shape index: {}]   ;;  %s1370_s5 = inlined_call_operand.vmem [shape: bf16[64,32], index: 5, kind: input, shape index: {}]   ;;  %s1371_s6 = inlined_call_operand.vmem [shape: f32[1,32], index: 6, kind: input, shape index: {}]   ;;  %s1372_s7 = inlined_call_operand.vmem [shape: f32[1,32], index: 7, kind: input, shape index: {}]   ;;  %s1373_s8 = inlined_call_operand.vmem [shape: f32[1,32], index: 8, kind: input, shape index: {}]   ;;  %s1374_s9 = inlined_call_operand.vmem [shape: f32[1,32], index: 9, kind: input, shape index: {}]   ;;  %s1375_s10 = inlined_call_operand.hbm [shape: f32[16,32], index: 10, kind: output, shape index: {}]  }
   0x1   :  { %16 = vsyncpa [#allocation6], 0 }
   0x2   :  { %17 = vsyncpa [#allocation4], 0  ;;  %s25_s15 = sshll.u32 %s1366_s1, 4  ;;  %s1106_s16 = smov [#allocation2]   ;;  %s26_s15 = int_to_ptr.hbm [resolvable:$true] %s25_s15 }
   0x3   :  { %s27_s17 = sshll.u32 %s1106_s16, 4  ;;  %s39_s20 = sshll.u32 %s1369_s4, 4  ;;  %s28_s17 = int_to_ptr.vmem [resolvable:$true] %s27_s17  ;;  %s40_s20 = int_to_ptr.hbm [resolvable:$true] %s39_s20 }
   0x4   :  { %30 = dma.hbm_to_vmem [thread:$0]  %s26_s15, 128, %s28_s17, [#allocation3]  }
   0x5   :  { %s1107_s21 = smov [#allocation5]   ;;  %s1108_s23 = smov 64  }
   0x6   :  { %s41_s22 = sshll.u32 %s1107_s21, 4  ;;  %s1109_s24 = smov 4   ;;  %s42_s22 = int_to_ptr.vmem [resolvable:$true] %s41_s22 }
   0x7   :  { %47 = dma.hbm_to_vmem [thread:$0]  %s40_s20, 256, %s42_s22, [#allocation6], %s1108_s23, %s1108_s23, %s1109_s24  }
   0x8   :  { %1100 = dma.done.wait [#allocation3], 128  }
   0x9   :  { %1101 = vsyncadd [#allocation3], 4294967168 }
   0xa   :  { %1102 = dma.done.wait [#allocation6], 256  }
   0xb   :  { %1103 = vsyncadd [#allocation6], 4294967040  ;;  %v930_v0 = vld [vmem:[%s1367_s2 + $0x8] sm:$0xff]  ;;  %v929_v1 = vld [vmem:[%s1367_s2] sm:$0xff]  ;;  %vm86_vm0 = vcmask 261120   ;;  %s1110_s2 = smov 120  }
   0xc   :  { %v1198_v2 = vld [vmem:[%s1365_s0] sm:$0xff]  ;;  %96 = vmatpush.bf16.msra.mxu0 %v930_v0  ;;  %v1203_v3 = vld [vmem:[%s1365_s0 + $0x8] sm:$0xff]  ;;  %s1111_s11 = smov 88   ;;  %s1112_s0 = smov 96   ;;  %vm112_vm1 = vcmask 64512   ;;  %vm185_vm2 = vcmask 1043456  }
   0xd   :  { %v69_v4 = vpack.c.bf16 %v1203_v3, %v1198_v2  ;;  %s1113_s12 = smov 112   ;;  %s1114_s13 = smov 80   ;;  %v106_v35 = vld [vmem:[#allocation2] sm:$0xff]  ;;  %vm585_vm3 = vcmask 130048   ;;  %vm588_vm4 = vcmask 195584   ;;  %vm765_vm10 = vcmask 523264  }
   0xe   :  { %s1115_s14 = smov 72   ;;  %s1116_s15 = smov 104  }
   0xf   :  { %s1117_s16 = smov 56   ;;  %s1118_s17 = smov 48  }
  0x10   :  { %97 = vmatpush.bf16.msra.mxu0 %v929_v1  ;;  %s1119_s18 = smov 40   ;;  %s1120_s19 = smov 8  }
  0x11   :  { %s1121_s20 = smov 16   ;;  %s1122_s21 = smov 24  }
  0x13   :  { %877 = vmatmul.msk.bf16.vlgmr.msra.gmra.mxu0 %vm86_vm0, %v69_v4 }
  0x90   :  { %v99_v5 = vpop.f32.mrf.mxu0 }
  0x91   :  { %v104_v6 = vpack.c.bf16 %v99_v5, %v99_v5 }
  0x93   :  { %v108_v7 = vunpack.c.l.b16 %v104_v6 }
  0x95   :  { %v1208_v8 = vpack.c.b16 %v108_v7, %v108_v7 }
  0x97   :  { %223 = vrot.lane.b32.xlu2 %v1208_v8, %s1110_s2  ;;  %225 = vrot.lane.b32.xlu1 %v1208_v8, %s1111_s11 }
  0x98   :  { %110 = vrot.lane.b32.xlu0 %v1208_v8, %s1112_s0  ;;  %v101_v9 = vpop.f32.mrf.mxu0 }
  0x99   :  { %v105_v10 = vpack.c.bf16 %v101_v9, %v101_v9 }
  0x9b   :  { %v133_v11 = vunpack.c.l.b16 %v105_v10 }
  0x9d   :  { %v1213_v12 = vpack.c.b16 %v133_v11, %v133_v11 }
  0x9f   :  { %246 = vrot.lane.b32.xlu2 %v1213_v12, %s1110_s2  ;;  %248 = vrot.lane.b32.xlu1 %v1213_v12, %s1111_s11 }
  0xa0   :  { %135 = vrot.lane.b32.xlu0 %v1213_v12, %s1112_s0 }
  0xa7   :  { %335 = vrot.lane.b32.xlu2 %v1208_v8, %s1113_s12  ;;  %360 = vrot.lane.b32.xlu1 %v1213_v12, %s1114_s13 }
  0xa8   :  { %337 = vrot.lane.b32.xlu0 %v1208_v8, %s1114_s13 }
  0xaf   :  { %472 = vrot.lane.b32.xlu2 %v1213_v12, %s1115_s14  ;;  %449 = vrot.lane.b32.xlu1 %v1208_v8, %s1115_s14 }
  0xb0   :  { %358 = vrot.lane.b32.xlu0 %v1213_v12, %s1113_s12 }
  0xb7   :  { %470 = vrot.lane.b32.xlu1 %v1213_v12, %s1116_s15 }
  0xb8   :  { %447 = vrot.lane.b32.xlu0 %v1208_v8, %s1116_s15 }
  0xf1   :  { %v224_v13 = vpop.permute.xlu2 %223 }
  0xf9   :  { %v247_v18 = vpop.permute.xlu2 %246 }
 0x101   :  { %v336_v23 = vpop.permute.xlu2 %335 }
 0x109   :  { %v226_v14 = vpop.permute.xlu1 %225  ;;  %v473_v28 = vpop.permute.xlu2 %472 }
 0x10a   :  { %v111_v15 = vpop.permute.xlu0 %110  ;;  %v231_v16 = vsel %vm112_vm1, %v226_v14, 0  ;;  %v478_v31 = vsel %vm112_vm1, %v473_v28, 0 }
 0x10b   :  { %v117_v17 = vsel %vm112_vm1, %v111_v15, 0  ;;  %240 = vmatpush.bf16.xpose.msrb.mxu0 %v231_v16 }
 0x10c   :  { %126 = vmatpush.bf16.xpose.msra.mxu1 %v117_v17 }
 0x111   :  { %v249_v19 = vpop.permute.xlu1 %248 }
 0x112   :  { %v136_v20 = vpop.permute.xlu0 %135  ;;  %882 = vmatmul.msk.bf16.vlgmr.msrb.gmra.mxu0 %vm112_vm1, %v224_v13  ;;  %v254_v21 = vsel %vm112_vm1, %v249_v19, 0 }
 0x113   :  { %878 = vmatmul.msk.bf16.vlgmr.msra.gmra.mxu1 %vm112_vm1, %v104_v6  ;;  %v141_v22 = vsel %vm112_vm1, %v136_v20, 0 }
 0x114   :  { %150 = vmatpush.bf16.xpose.msra.mxu2 %v141_v22  ;;  %263 = vmatpush.bf16.xpose.msrb.mxu1 %v254_v21 }
 0x119   :  { %v361_v24 = vpop.permute.xlu1 %360 }
 0x11a   :  { %v366_v25 = vsel %vm112_vm1, %v361_v24, 0  ;;  %v338_v26 = vpop.permute.xlu0 %337 }
 0x11b   :  { %v343_v27 = vsel %vm112_vm1, %v338_v26, 0  ;;  %879 = vmatmul.msk.bf16.vlgmr.msra.gmra.mxu2 %vm112_vm1, %v105_v10 }
 0x11c   :  { %375 = vmatpush.bf16.xpose.msra.mxu1 %v366_v25  ;;  %352 = vmatpush.bf16.xpose.msra.mxu0 %v343_v27 }
 0x121   :  { %v450_v29 = vpop.permute.xlu1 %449 }
 0x122   :  { %v455_v30 = vsel %vm112_vm1, %v450_v29, 0  ;;  %v359_v32 = vpop.permute.xlu0 %358 }
 0x123   :  { %883 = vmatmul.msk.bf16.vlgmr.msrb.gmra.mxu1 %vm112_vm1, %v247_v18  ;;  %886 = vmatmul.msk.bf16.vlgmr.msra.gmra.mxu0 %vm112_vm1, %v336_v23 }
 0x124   :  { %487 = vmatpush.bf16.xpose.msrb.mxu1 %v478_v31  ;;  %464 = vmatpush.bf16.xpose.msrb.mxu0 %v455_v30 }
 0x129   :  { %v471_v34 = vpop.permute.xlu1 %470 }
 0x12a   :  { %v448_v33 = vpop.permute.xlu0 %447 }
 0x133   :  { %887 = vmatmul.msk.bf16.vlgmr.msra.gmra.mxu1 %vm112_vm1, %v359_v32  ;;  %890 = vmatmul.msk.bf16.vlgmr.msrb.gmra.mxu0 %vm112_vm1, %v448_v33 }
 0x143   :  { %891 = vmatmul.msk.bf16.vlgmr.msrb.gmra.mxu1 %vm112_vm1, %v471_v34 }
 0x18f   :  { %v242_v36 = vpop.f32.mrf.mxu0 }
 0x190   :  { %v128_v37 = vpop.f32.mrf.mxu1  ;;  %v243_v38 = vadd.f32 %v242_v36, %v106_v35 }
 0x191   :  { %v129_v39 = vadd.f32 %v128_v37, %v106_v35 }
 0x192   :  { %v269_v40 = vsel %vm112_vm1, %v243_v38, -inf }
 0x193   :  { %v156_v41 = vsel %vm112_vm1, %v129_v39, -inf  ;;  %270 = vmax.xlane.f32.xlu1 %v269_v40 }
 0x194   :  { %157 = vmax.xlane.f32.xlu2 %v156_v41 }
 0x197   :  { %v244_v42 = vpop.f32.mrf.mxu0 }
 0x198   :  { %v130_v43 = vpop.f32.mrf.mxu1 }
 0x19e   :  { %v152_v44 = vpop.f32.mrf.mxu2 }
 0x19f   :  { %v153_v45 = vadd.f32 %v152_v44, %v106_v35 }
 0x1a0   :  { %v265_v46 = vpop.f32.mrf.mxu1  ;;  %v354_v47 = vpop.f32.mrf.mxu0 }
 0x1a1   :  { %v266_v48 = vadd.f32 %v265_v46, %v106_v35  ;;  %v1244_v49 = vadd.f32 %v354_v47, %v106_v35  ;;  %v159_v50 = vsel %vm112_vm1, %v153_v45, -inf }
 0x1a2   :  { %160 = vmax.xlane.f32.xlu0 %v159_v50 }
 0x1a3   :  { %v272_v51 = vsel %vm112_vm1, %v266_v48, -inf  ;;  %v381_v4 = vsel %vm112_vm1, %v1244_v49, -inf }
 0x1a4   :  { %273 = vmax.xlane.f32.xlu2 %v272_v51 }
 0x1a6   :  { %v154_v52 = vpop.f32.mrf.mxu2 }
 0x1a8   :  { %v267_v53 = vpop.f32.mrf.mxu1  ;;  %v356_v54 = vpop.f32.mrf.mxu0 }
 0x1ac   :  { %202 = vrot.lane.b32.xlu1 %v1213_v12, %s1108_s23 }
 0x1b0   :  { %v377_v55 = vpop.f32.mrf.mxu1  ;;  %v466_v56 = vpop.f32.mrf.mxu0 }
 0x1b1   :  { %v378_v62 = vadd.f32 %v377_v55, %v106_v35  ;;  %v467_v1 = vadd.f32 %v466_v56, %v106_v35 }
 0x1b3   :  { %v384_v0 = vsel %vm112_vm1, %v378_v62, -inf  ;;  %v493_v5 = vsel %vm112_vm1, %v467_v1, -inf }
 0x1b4   :  { %314 = vrot.lane.b32.xlu1 %v1213_v12, %s1117_s16 }
 0x1b6   :  { %293 = vrot.lane.b32.xlu0 %v1208_v8, %s1117_s16 }
 0x1b8   :  { %v379_v57 = vpop.f32.mrf.mxu1  ;;  %v468_v58 = vpop.f32.mrf.mxu0 }
 0x1bc   :  { %180 = vrot.lane.b32.xlu2 %v1208_v8, %s1108_s23 }
 0x1c0   :  { %v489_v59 = vpop.f32.mrf.mxu1 }
 0x1c1   :  { %v490_v61 = vadd.f32 %v489_v59, %v106_v35 }
 0x1c3   :  { %v496_v63 = vsel %vm112_vm1, %v490_v61, -inf }
 0x1c8   :  { %v491_v60 = vpop.f32.mrf.mxu1 }
 0x1de   :  { %497 = vmax.xlane.f32.xlu1 %v496_v63 }
 0x1e0   :  { %385 = vmax.xlane.f32.xlu0 %v384_v0 }
 0x1e5   :  { %382 = vmax.xlane.f32.xlu2 %v381_v4 }
 0x1e8   :  { %494 = vmax.xlane.f32.xlu0 %v493_v5 }
 0x206   :  { %v271_v6 = vpop.xlane.xlu1 %270 }
 0x207   :  { %v158_v7 = vpop.xlane.xlu2 %157  ;;  %v275_v9 = vsub.f32 %v243_v38, %v271_v6 }
 0x208   :  { %v162_v10 = vsub.f32 %v129_v39, %v158_v7 }
 0x209   :  { %v277_v11 = vmul.f32 1.442695, %v275_v9 }
 0x20a   :  { %v164_v13 = vmul.f32 1.442695, %v162_v10 }
 0x20b   :  { %978 = vpow2.f32 %v277_v11 }
 0x20c   :  { %980 = vpow2.f32 %v164_v13 }
 0x211   :  { %v1259_v14 = vpop.eup %978 }
 0x212   :  { %v1261_v15 = vpop.eup %980  ;;  %v281_v16 = vsel %vm112_vm1, %v1259_v14, 0.0 }
 0x213   :  { %v168_v17 = vsel %vm112_vm1, %v1261_v15, 0.0  ;;  %282 = vadd.xlane.f32.xlu0 %v281_v16 }
 0x214   :  { %169 = vadd.xlane.f32.xlu1 %v168_v17 }
 0x215   :  { %v161_v18 = vpop.xlane.xlu0 %160 }
 0x216   :  { %v163_v19 = vsub.f32 %v153_v45, %v161_v18 }
 0x217   :  { %v274_v20 = vpop.xlane.xlu2 %273 }
 0x218   :  { %v166_v21 = vmul.f32 1.442695, %v163_v19  ;;  %v276_v22 = vsub.f32 %v266_v48, %v274_v20 }
 0x21a   :  { %982 = vpow2.f32 %v166_v21  ;;  %v279_v23 = vmul.f32 1.442695, %v276_v22 }
 0x21c   :  { %984 = vpow2.f32 %v279_v23 }
 0x21e   :  { %v203_v24 = vpop.permute.xlu1 %202 }
 0x21f   :  { %v181_v25 = vpop.permute.xlu2 %180  ;;  %v208_v26 = vsel %vm185_vm2, %v203_v24, 0 }
 0x220   :  { %v1268_v27 = vpop.eup %982  ;;  %v187_v28 = vsel %vm185_vm2, %v181_v25, 0 }
 0x221   :  { %196 = vmatpush.bf16.msra.mxu3 %v187_v28  ;;  %v171_v29 = vsel %vm112_vm1, %v1268_v27, 0.0 }
 0x222   :  { %v1273_v30 = vpop.eup %984  ;;  %172 = vadd.xlane.f32.xlu0 %v171_v29 }
 0x223   :  { %v284_v31 = vsel %vm112_vm1, %v1273_v30, 0.0 }
 0x224   :  { %285 = vadd.xlane.f32.xlu2 %v284_v31 }
 0x225   :  { %217 = vmatpush.bf16.msrb.mxu3 %v208_v26 }
 0x226   :  { %v315_v34 = vpop.permute.xlu1 %314 }
 0x227   :  { %v320_v63 = vsel %vm185_vm2, %v315_v34, 0 }
 0x228   :  { %v294_v32 = vpop.permute.xlu0 %293 }
 0x229   :  { %v299_v33 = vsel %vm185_vm2, %v294_v32, 0 }
 0x22a   :  { %308 = vmatpush.bf16.msrb.mxu2 %v299_v33 }
 0x22d   :  { %426 = vrot.lane.b32.xlu1 %v1213_v12, %s1118_s17 }
 0x23c   :  { %405 = vrot.lane.b32.xlu2 %v1208_v8, %s1118_s17  ;;  %s855_s17 = sshll.u32 %s1375_s10, 4  ;;  %s856_s17 = int_to_ptr.hbm [resolvable:$true] %s855_s17 }
 0x251   :  { %v498_v35 = vpop.xlane.xlu1 %497 }
 0x252   :  { %v500_v36 = vsub.f32 %v490_v61, %v498_v35 }
 0x253   :  { %v386_v37 = vpop.xlane.xlu0 %385 }
 0x254   :  { %v388_v38 = vsub.f32 %v378_v62, %v386_v37  ;;  %v503_v40 = vmul.f32 1.442695, %v500_v36 }
 0x256   :  { %v391_v39 = vmul.f32 1.442695, %v388_v38 }
 0x258   :  { %986 = vpow2.f32 %v391_v39  ;;  %v383_v41 = vpop.xlane.xlu2 %382 }
 0x259   :  { %v387_v42 = vsub.f32 %v1244_v49, %v383_v41  ;;  %988 = vpow2.f32 %v503_v40 }
 0x25b   :  { %v389_v43 = vmul.f32 1.442695, %v387_v42  ;;  %v495_v44 = vpop.xlane.xlu0 %494 }
 0x25c   :  { %v499_v45 = vsub.f32 %v467_v1, %v495_v44 }
 0x25d   :  { %990 = vpow2.f32 %v389_v43 }
 0x25e   :  { %v987_v46 = vpop.eup %986  ;;  %v501_v47 = vmul.f32 1.442695, %v499_v45 }
 0x25f   :  { %v396_v48 = vsel %vm112_vm1, %v987_v46, 0.0  ;;  %v1282_v50 = vpop.eup %988 }
 0x260   :  { %992 = vpow2.f32 %v501_v47  ;;  %397 = vadd.xlane.f32.xlu0 %v396_v48  ;;  %v508_v53 = vsel %vm112_vm1, %v1282_v50, 0.0 }
 0x263   :  { %v991_v51 = vpop.eup %990 }
 0x264   :  { %v393_v52 = vsel %vm112_vm1, %v991_v51, 0.0 }
 0x265   :  { %394 = vadd.xlane.f32.xlu1 %v393_v52  ;;  %509 = vadd.xlane.f32.xlu2 %v508_v53 }
 0x266   :  { %v993_v49 = vpop.eup %992 }
 0x267   :  { %v505_v54 = vsel %vm112_vm1, %v993_v49, 0.0 }
 0x268   :  { %506 = vadd.xlane.f32.xlu0 %v505_v54  ;;  %v931_v54 = vld [vmem:[%s1368_s3] sm:$0xff] }
 0x27c   :  { %517 = vrot.lane.b32.xlu0 %v1208_v8, %s1119_s18 }
 0x27e   :  { %538 = vrot.lane.b32.xlu1 %v1213_v12, %s1119_s18 }
 0x286   :  { %v283_v55 = vpop.xlane.xlu0 %282 }
 0x287   :  { %v170_v56 = vpop.xlane.xlu1 %169  ;;  %994 = vrcp.f32 %v283_v55 }
 0x288   :  { %996 = vrcp.f32 %v170_v56 }
 0x28d   :  { %v995_v57 = vpop.eup %994 }
 0x28e   :  { %v997_v58 = vpop.eup %996  ;;  %v289_v59 = vmul.f32 %v995_v57, %v1259_v14 }
 0x28f   :  { %v176_v60 = vmul.f32 %v997_v58, %v1261_v15 }
 0x290   :  { %v291_v61 = vpack.c.bf16 %v289_v59, %v289_v59 }
 0x291   :  { %v178_v62 = vpack.c.bf16 %v176_v60, %v176_v60 }
 0x292   :  { %884 = vmatmul.msk.bf16.vlgmr.msrb.gmra.mxu2 %vm112_vm1, %v291_v61 }
 0x293   :  { %880 = vmatmul.msk.bf16.vlgmr.msra.gmra.mxu3 %vm112_vm1, %v178_v62 }
 0x294   :  { %329 = vmatpush.bf16.msra.mxu3 %v320_v63 }
 0x295   :  { %v173_v8 = vpop.xlane.xlu0 %172 }
 0x296   :  { %998 = vrcp.f32 %v173_v8 }
 0x297   :  { %v286_v12 = vpop.xlane.xlu2 %285 }
 0x298   :  { %1000 = vrcp.f32 %v286_v12 }
 0x29c   :  { %v999_v0 = vpop.eup %998 }
 0x29d   :  { %v177_v1 = vmul.f32 %v999_v0, %v1268_v27 }
 0x29e   :  { %v1001_v10 = vpop.eup %1000 }
 0x29f   :  { %v406_v4 = vpop.permute.xlu2 %405  ;;  %v427_v6 = vpop.permute.xlu1 %426  ;;  %v179_v7 = vpack.c.bf16 %v177_v1, %v177_v1  ;;  %v290_v11 = vmul.f32 %v1001_v10, %v1273_v30 }
 0x2a0   :  { %v411_v5 = vsel %vm185_vm2, %v406_v4, 0  ;;  %v432_v9 = vsel %vm185_vm2, %v427_v6, 0 }
 0x2a1   :  { %420 = vmatpush.bf16.msra.mxu2 %v411_v5  ;;  %v292_v13 = vpack.c.bf16 %v290_v11, %v290_v11 }
 0x2a3   :  { %881 = vmatmul.msk.bf16.vlgmr.msrb.gmra.mxu3 %vm112_vm1, %v179_v7 }
 0x2a4   :  { %441 = vmatpush.bf16.msrb.mxu3 %v432_v9 }
 0x2b3   :  { %885 = vmatmul.msk.bf16.vlgmr.msra.gmra.mxu3 %vm112_vm1, %v292_v13 }
 0x2d3   :  { %v398_v14 = vpop.xlane.xlu0 %397 }
 0x2d4   :  { %1002 = vrcp.f32 %v398_v14 }
 0x2d8   :  { %v395_v15 = vpop.xlane.xlu1 %394  ;;  %v510_v21 = vpop.xlane.xlu2 %509 }
 0x2d9   :  { %1004 = vrcp.f32 %v395_v15  ;;  %v1123_v15 = vmov 32.0  }
 0x2da   :  { %v1003_v16 = vpop.eup %1002  ;;  %1006 = vrcp.f32 %v510_v21 }
 0x2db   :  { %v402_v17 = vmul.f32 %v1003_v16, %v987_v46  ;;  %v507_v23 = vpop.xlane.xlu0 %506 }
 0x2dc   :  { %1008 = vrcp.f32 %v507_v23 }
 0x2dd   :  { %v404_v18 = vpack.c.bf16 %v402_v17, %v402_v17  ;;  %1010 = vrcp.f32 %v1123_v15 }
 0x2df   :  { %889 = vmatmul.msk.bf16.vlgmr.msrb.gmra.mxu3 %vm112_vm1, %v404_v18  ;;  %v1005_v19 = vpop.eup %1004 }
 0x2e0   :  { %v401_v20 = vmul.f32 %v1005_v19, %v991_v51  ;;  %v1007_v24 = vpop.eup %1006 }
 0x2e1   :  { %v514_v27 = vmul.f32 %v1007_v24, %v1282_v50 }
 0x2e2   :  { %v403_v22 = vpack.c.bf16 %v401_v20, %v401_v20  ;;  %v1009_v25 = vpop.eup %1008 }
 0x2e3   :  { %v513_v28 = vmul.f32 %v1009_v25, %v993_v49  ;;  %v516_v32 = vpack.c.bf16 %v514_v27, %v514_v27  ;;  %v932_v49 = vld [vmem:[%s1368_s3 + $0x8] sm:$0xff]  ;;  %v1011_v16 = vpop.eup %1010 }
 0x2e4   :  { %888 = vmatmul.msk.bf16.vlgmr.msra.gmra.mxu2 %vm112_vm1, %v403_v22  ;;  %617 = vmatpush.bf16.msra.mxu0 %v932_v49  ;;  %v636_v17 = vmul.f32 32.0, %v1011_v16  ;;  %vm640_vm5 = vweird.f32 %v1011_v16 }
 0x2e5   :  { %v515_v33 = vpack.c.bf16 %v513_v28, %v513_v28 }
 0x2e6   :  { %v637_v18 = vsub.f32 1.0, %v636_v17 }
 0x2e8   :  { %618 = vmatpush.bf16.msra.mxu0 %v931_v54  ;;  %v638_v19 = vmul.f32 %v1011_v16, %v637_v18 }
 0x2ea   :  { %v639_v20 = vadd.f32 %v1011_v16, %v638_v19 }
 0x2ec   :  { %v1322_v21 = vsel %vm640_vm5, %v1011_v16, %v639_v20 }
 0x2ee   :  { %v518_v26 = vpop.permute.xlu0 %517 }
 0x2ef   :  { %v523_v29 = vsel %vm185_vm2, %v518_v26, 0 }
 0x2f0   :  { %v539_v30 = vpop.permute.xlu1 %538  ;;  %532 = vmatpush.bf16.msrb.mxu2 %v523_v29 }
 0x2f1   :  { %v544_v31 = vsel %vm185_vm2, %v539_v30, 0  ;;  %v934_v30 = vld [vmem:[#allocation5 + $0x8] sm:$0xff] }
 0x2f2   :  { %553 = vmatpush.bf16.msra.mxu3 %v544_v31  ;;  %722 = vmatpush.bf16.msra.mxu1 %v934_v30 }
 0x2f4   :  { %892 = vmatmul.msk.bf16.vlgmr.msrb.gmra.mxu2 %vm112_vm1, %v515_v33 }
 0x2f5   :  { %893 = vmatmul.msk.bf16.vlgmr.msra.gmra.mxu3 %vm112_vm1, %v516_v32  ;;  %v933_v32 = vld [vmem:[#allocation5] sm:$0xff] }
 0x2f6   :  { %723 = vmatpush.bf16.msra.mxu1 %v933_v32 }
 0x315   :  { %v310_v34 = vpop.f32.mrf.mxu2 }
 0x316   :  { %v198_v35 = vpop.f32.mrf.mxu3 }
 0x31d   :  { %v312_v36 = vpop.f32.mrf.mxu2 }
 0x31e   :  { %v200_v37 = vpop.f32.mrf.mxu3 }
 0x326   :  { %v219_v38 = vpop.f32.mrf.mxu3 }
 0x32e   :  { %v221_v39 = vpop.f32.mrf.mxu3 }
 0x336   :  { %v331_v40 = vpop.f32.mrf.mxu3 }
 0x337   :  { %v959_v41 = vpack.i.bf16 %v331_v40, %v310_v34  ;;  %v938_v40 = vld [vmem:[%s1370_s5 + $0x18] sm:$0xff] }
 0x338   :  { %773 = vmatpush.bf16.msra.mxu2 %v938_v40 }
 0x339   :  { %960 = vrot.lane.b32.xlu0 %v959_v41, %s1120_s19 }
 0x33e   :  { %v333_v42 = vpop.f32.mrf.mxu3 }
 0x362   :  { %v443_v43 = vpop.f32.mrf.mxu3 }
 0x367   :  { %v422_v44 = vpop.f32.mrf.mxu2 }
 0x368   :  { %v964_v45 = vpack.i.bf16 %v443_v43, %v422_v44 }
 0x36a   :  { %v445_v46 = vpop.f32.mrf.mxu3  ;;  %965 = vrot.lane.b32.xlu1 %v964_v45, %s1121_s20 }
 0x36f   :  { %v424_v47 = vpop.f32.mrf.mxu2 }
 0x377   :  { %v534_v48 = vpop.f32.mrf.mxu2 }
 0x378   :  { %v555_v50 = vpop.f32.mrf.mxu3 }
 0x379   :  { %v969_v51 = vpack.i.bf16 %v555_v50, %v534_v48 }
 0x37b   :  { %970 = vrot.lane.b32.xlu0 %v969_v51, %s1122_s21 }
 0x37f   :  { %v536_v52 = vpop.f32.mrf.mxu2 }
 0x380   :  { %v557_v53 = vpop.f32.mrf.mxu3 }
 0x3ab   :  { %v961_v55 = vpop.permute.xlu0 %960 }
 0x3ac   :  { %v963_v57 = vunpack.i.h.bf16 %v961_v55  ;;  %v962_v58 = vunpack.i.l.bf16 %v961_v55 }
 0x3ae   :  { %v584_v62 = vsel %vm112_vm1, %v219_v38, %v963_v57  ;;  %v583_v63 = vsel %vm112_vm1, %v198_v35, %v962_v58 }
 0x3dc   :  { %v966_v56 = vpop.permute.xlu1 %965 }
 0x3dd   :  { %v968_v59 = vunpack.i.h.bf16 %v966_v56  ;;  %v967_v60 = vunpack.i.l.bf16 %v966_v56 }
 0x3df   :  { %v586_v0 = vsel %vm585_vm3, %v583_v63, %v967_v60  ;;  %v587_v1 = vsel %vm585_vm3, %v584_v62, %v968_v59  ;;  %v974_v59 = vld [vmem:[%s1371_s6] ss:$0 sm:$0xff] }
 0x3ed   :  { %v971_v61 = vpop.permute.xlu0 %970 }
 0x3ee   :  { %v973_v8 = vunpack.i.h.bf16 %v971_v61  ;;  %v972_v12 = vunpack.i.l.bf16 %v971_v61 }
 0x3f0   :  { %v589_v4 = vsel %vm588_vm4, %v586_v0, %v972_v12  ;;  %v590_v5 = vsel %vm588_vm4, %v587_v1, %v973_v8  ;;  %v975_v8 = vld [vmem:[%s1372_s7] ss:$0 sm:$0xff] }
 0x3f1   :  { %v591_v6 = vpack.c.bf16 %v590_v5, %v589_v4 }
 0x3f3   :  { %902 = vmatmul.msk.bf16.vlgmr.msra.gmra.mxu0 %vm86_vm0, %v591_v6  ;;  %v937_v6 = vld [vmem:[%s1370_s5 + $0x10] sm:$0xff] }
 0x3f4   :  { %774 = vmatpush.bf16.msra.mxu2 %v937_v6 }
 0x470   :  { %v620_v7 = vpop.f32.mrf.mxu0 }
 0x471   :  { %v625_v9 = vadd.f32 %v620_v7, %v1198_v2  ;;  %v936_v7 = vld [vmem:[%s1370_s5 + $0x8] sm:$0xff] }
 0x472   :  { %775 = vmatpush.bf16.msra.mxu2 %v936_v7 }
 0x473   :  { %v629_v10 = vsel %vm86_vm0, %v625_v9, 0.0 }
 0x474   :  { %630 = vadd.xlane.f32.xlu1 %v629_v10 }
 0x478   :  { %v622_v11 = vpop.f32.mrf.mxu0 }
 0x479   :  { %v626_v13 = vadd.f32 %v622_v11, %v1203_v3 }
 0x47b   :  { %v632_v14 = vsel %vm86_vm0, %v626_v13, 0.0 }
 0x47c   :  { %633 = vadd.xlane.f32.xlu2 %v632_v14 }
 0x4e7   :  { %v631_v2 = vpop.xlane.xlu1 %630 }
 0x4e8   :  { %v642_v22 = vmul.f32 %v1322_v21, %v631_v2 }
 0x4ea   :  { %v644_v23 = vsub.f32 %v625_v9, %v642_v22  ;;  %v935_v9 = vld [vmem:[%s1370_s5] sm:$0xff] }
 0x4eb   :  { %776 = vmatpush.bf16.msra.mxu2 %v935_v9 }
 0x4ec   :  { %v646_v24 = vmul.f32 %v644_v23, %v644_v23  ;;  %v687_v61 = vmul.f32 %v974_v59, %v644_v23 }
 0x4ee   :  { %v648_v3 = vsel %vm86_vm0, %v646_v24, 0.0 }
 0x4ef   :  { %649 = vadd.xlane.f32.xlu0 %v648_v3  ;;  %v634_v25 = vpop.xlane.xlu2 %633 }
 0x4f0   :  { %v643_v26 = vmul.f32 %v1322_v21, %v634_v25 }
 0x4f2   :  { %v645_v27 = vsub.f32 %v626_v13, %v643_v26 }
 0x4f4   :  { %v647_v28 = vmul.f32 %v645_v27, %v645_v27  ;;  %v688_v62 = vmul.f32 %v974_v59, %v645_v27 }
 0x4f6   :  { %v651_v29 = vsel %vm86_vm0, %v647_v28, 0.0 }
 0x4f7   :  { %652 = vadd.xlane.f32.xlu2 %v651_v29 }
 0x562   :  { %v650_v31 = vpop.xlane.xlu0 %649 }
 0x563   :  { %v654_v33 = vmul.f32 0.032258064, %v650_v31 }
 0x565   :  { %1012 = vrsqrt.f32 %v654_v33  ;;  %vm663_vm6 = vcmp.eq.f32.partialorder %v654_v33, inf  ;;  %v666_v47 = vand.u32 2147483648, %v654_v33  ;;  %vm665_vm7 = vcmp.eq.f32.partialorder %v654_v33, 0.0 }
 0x56a   :  { %v653_v34 = vpop.xlane.xlu2 %652 }
 0x56b   :  { %v1013_v35 = vpop.eup %1012  ;;  %v655_v36 = vmul.f32 0.032258064, %v653_v34 }
 0x56c   :  { %v657_v37 = vmul.f32 %v1013_v35, %v654_v33 }
 0x56d   :  { %1014 = vrsqrt.f32 %v655_v36  ;;  %vm675_vm8 = vcmp.eq.f32.partialorder %v655_v36, inf  ;;  %v678_v55 = vand.u32 2147483648, %v655_v36  ;;  %vm677_vm9 = vcmp.eq.f32.partialorder %v655_v36, 0.0 }
 0x56e   :  { %v658_v38 = vmul.f32 %v1013_v35, %v657_v37 }
 0x570   :  { %v659_v39 = vmul.f32 0.5, %v658_v38 }
 0x572   :  { %v660_v41 = vsub.f32 1.5, %v659_v39 }
 0x573   :  { %v1015_v42 = vpop.eup %1014 }
 0x574   :  { %v661_v43 = vmul.f32 %v1013_v35, %v660_v41  ;;  %v669_v44 = vmul.f32 %v1015_v42, %v655_v36 }
 0x576   :  { %v662_v45 = vmul.f32 %v661_v43, %v654_v33  ;;  %v670_v46 = vmul.f32 %v1015_v42, %v669_v44 }
 0x578   :  { %v664_v48 = vsel %vm663_vm6, %v654_v33, %v662_v45  ;;  %v671_v50 = vmul.f32 0.5, %v670_v46 }
 0x579   :  { %v667_v51 = vsel %vm665_vm7, %v666_v47, %v664_v48 }
 0x57a   :  { %v672_v52 = vsub.f32 1.5, %v671_v50  ;;  %v680_v49 = vadd.f32 1e-06, %v667_v51 }
 0x57c   :  { %v673_v53 = vmul.f32 %v1015_v42, %v672_v52  ;;  %1016 = vrcp.f32 %v680_v49  ;;  %v976_v52 = vld [vmem:[%s1373_s8] ss:$0 sm:$0xff]  ;;  %s1124_s8 = smov [#allocation7]  }
 0x57d   :  { %s853_s14 = sshll.u32 %s1124_s8, 4  ;;  %s854_s14 = int_to_ptr.vmem [resolvable:$true] %s853_s14 }
 0x57e   :  { %v674_v54 = vmul.f32 %v673_v53, %v655_v36 }
 0x580   :  { %v676_v56 = vsel %vm675_vm8, %v655_v36, %v674_v54 }
 0x581   :  { %v679_v57 = vsel %vm677_vm9, %v678_v55, %v676_v56 }
 0x582   :  { %v681_v58 = vadd.f32 1e-06, %v679_v57  ;;  %v1017_v60 = vpop.eup %1016  ;;  %v977_v57 = vld [vmem:[%s1374_s9] ss:$0 sm:$0xff]  ;;  %s1125_s9 = smov 128  }
 0x583   :  { %v689_v63 = vmul.f32 %v1017_v60, %v687_v61 }
 0x584   :  { %1018 = vrcp.f32 %v681_v58 }
 0x585   :  { %v694_v1 = vadd.f32 %v975_v8, %v689_v63 }
 0x58a   :  { %v1019_v12 = vpop.eup %1018 }
 0x58b   :  { %v690_v0 = vmul.f32 %v1019_v12, %v688_v62 }
 0x58d   :  { %v695_v4 = vadd.f32 %v975_v8, %v690_v0 }
 0x58f   :  { %v696_v5 = vpack.c.bf16 %v695_v4, %v694_v1 }
 0x591   :  { %911 = vmatmul.msk.bf16.vlgmr.msra.gmra.mxu1 %vm86_vm0, %v696_v5 }
 0x60e   :  { %v725_v10 = vpop.f32.mrf.mxu1 }
 0x60f   :  { %v730_v13 = vmax.f32 %v725_v10, 0.0 }
 0x616   :  { %v727_v11 = vpop.f32.mrf.mxu1 }
 0x617   :  { %v731_v14 = vmax.f32 %v727_v11, 0.0 }
 0x619   :  { %v732_v15 = vpack.c.bf16 %v731_v14, %v730_v13 }
 0x61b   :  { %928 = vmatmul.msk.bf16.vlgmr.msra.gmra.mxu2 %vm765_vm10, %v732_v15 }
 0x69e   :  { %v778_v16 = vpop.f32.mrf.mxu2 }
 0x69f   :  { %v783_v17 = vadd.f32 %v778_v16, %v694_v1 }
 0x6a1   :  { %v787_v18 = vsel %vm86_vm0, %v783_v17, 0.0 }
 0x6a2   :  { %788 = vadd.xlane.f32.xlu2 %v787_v18 }
 0x6a6   :  { %v780_v19 = vpop.f32.mrf.mxu2 }
 0x6a7   :  { %v784_v20 = vadd.f32 %v780_v19, %v695_v4 }
 0x6a9   :  { %v790_v2 = vsel %vm86_vm0, %v784_v20, 0.0 }
 0x6aa   :  { %791 = vadd.xlane.f32.xlu2 %v790_v2 }
 0x715   :  { %v789_v22 = vpop.xlane.xlu2 %788 }
 0x716   :  { %v793_v23 = vmul.f32 %v789_v22, %v1322_v21 }
 0x718   :  { %v795_v24 = vsub.f32 %v783_v17, %v793_v23 }
 0x71a   :  { %v797_v3 = vmul.f32 %v795_v24, %v795_v24  ;;  %v838_v55 = vmul.f32 %v976_v52, %v795_v24 }
 0x71c   :  { %v799_v25 = vsel %vm86_vm0, %v797_v3, 0.0 }
 0x71d   :  { %800 = vadd.xlane.f32.xlu2 %v799_v25  ;;  %v792_v26 = vpop.xlane.xlu2 %791 }
 0x71e   :  { %v794_v27 = vmul.f32 %v792_v26, %v1322_v21 }
 0x720   :  { %v796_v28 = vsub.f32 %v784_v20, %v794_v27 }
 0x722   :  { %v798_v29 = vmul.f32 %v796_v28, %v796_v28  ;;  %v839_v62 = vmul.f32 %v976_v52, %v796_v28 }
 0x724   :  { %v802_v30 = vsel %vm86_vm0, %v798_v29, 0.0 }
 0x725   :  { %803 = vadd.xlane.f32.xlu1 %v802_v30 }
 0x790   :  { %v801_v31 = vpop.xlane.xlu2 %800 }
 0x791   :  { %v805_v32 = vmul.f32 0.032258064, %v801_v31 }
 0x793   :  { %1020 = vrsqrt.f32 %v805_v32  ;;  %vm814_vm11 = vcmp.eq.f32.partialorder %v805_v32, inf  ;;  %v817_v44 = vand.u32 2147483648, %v805_v32  ;;  %vm816_vm12 = vcmp.eq.f32.partialorder %v805_v32, 0.0 }
 0x798   :  { %v804_v33 = vpop.xlane.xlu1 %803 }
 0x799   :  { %v1021_v34 = vpop.eup %1020  ;;  %v806_v35 = vmul.f32 0.032258064, %v804_v33 }
 0x79a   :  { %v808_v36 = vmul.f32 %v1021_v34, %v805_v32 }
 0x79b   :  { %1022 = vrsqrt.f32 %v806_v35  ;;  %vm826_vm13 = vcmp.eq.f32.partialorder %v806_v35, inf  ;;  %v829_v49 = vand.u32 2147483648, %v806_v35  ;;  %vm828_vm14 = vcmp.eq.f32.partialorder %v806_v35, 0.0 }
 0x79c   :  { %v809_v37 = vmul.f32 %v1021_v34, %v808_v36 }
 0x79e   :  { %v810_v38 = vmul.f32 0.5, %v809_v37 }
 0x7a0   :  { %v811_v39 = vsub.f32 1.5, %v810_v38 }
 0x7a1   :  { %v1023_v40 = vpop.eup %1022 }
 0x7a2   :  { %v812_v41 = vmul.f32 %v1021_v34, %v811_v39  ;;  %v820_v42 = vmul.f32 %v1023_v40, %v806_v35 }
 0x7a4   :  { %v813_v21 = vmul.f32 %v812_v41, %v805_v32  ;;  %v821_v43 = vmul.f32 %v1023_v40, %v820_v42 }
 0x7a6   :  { %v815_v45 = vsel %vm814_vm11, %v805_v32, %v813_v21  ;;  %v822_v46 = vmul.f32 0.5, %v821_v43 }
 0x7a7   :  { %v818_v47 = vsel %vm816_vm12, %v817_v44, %v815_v45 }
 0x7a8   :  { %v823_v48 = vsub.f32 1.5, %v822_v46  ;;  %v831_v50 = vadd.f32 1e-06, %v818_v47 }
 0x7aa   :  { %v824_v51 = vmul.f32 %v1023_v40, %v823_v48  ;;  %1024 = vrcp.f32 %v831_v50 }
 0x7ac   :  { %v825_v53 = vmul.f32 %v824_v51, %v806_v35 }
 0x7ae   :  { %v827_v54 = vsel %vm826_vm13, %v806_v35, %v825_v53 }
 0x7af   :  { %v830_v56 = vsel %vm828_vm14, %v829_v49, %v827_v54 }
 0x7b0   :  { %v1025_v58 = vpop.eup %1024  ;;  %v832_v59 = vadd.f32 1e-06, %v830_v56 }
 0x7b1   :  { %v840_v60 = vmul.f32 %v1025_v58, %v838_v55 }
 0x7b2   :  { %1026 = vrcp.f32 %v832_v59 }
 0x7b3   :  { %v845_v61 = vadd.f32 %v977_v57, %v840_v60 }
 0x7b5   :  { %847 = vst.msk [vmem:[#allocation7] sm:$0xff] %vm86_vm0, %v845_v61 }
 0x7b8   :  { %v1027_v63 = vpop.eup %1026 }
 0x7b9   :  { %v841_v8 = vmul.f32 %v1027_v63, %v839_v62 }
 0x7bb   :  { %v846_v12 = vadd.f32 %v977_v57, %v841_v8 }
 0x7bd   :  { %848 = vst.msk [vmem:[#allocation7 + $0x8] sm:$0xff] %vm86_vm0, %v846_v12 }
 0x7be   :  { %861 = dma.vmem_to_hbm [thread:$0]  %s854_s14, 256, %s856_s17, [#allocation4], %s1125_s9, %s1125_s9, %s1120_s19  }
 0x7bf   :  { %1104 = dma.done.wait [#allocation4], 256  }
 0x7c0   :  { %1105 = vsyncadd [#allocation4], 4294967040 }
 0x7c1   :  { %866 = vsyncpa [#allocation3], 1 }
 0x7c2   :  { %867 = vsyncpa [#allocation6], 1 }
 0x7c3   :  { %868 = vsyncpa [#allocation4], 1 }

</bundles_post_ra>
